<compile_context>
chip_gen: v5e
topology: v5e:2x2
jax: 0.10.0
libtpu: 0.0.40
codegen_flags: <defaults>
</compile_context>

<pallas_src>
import jax
import jax.numpy as jnp
from jax.experimental import pallas as pl
from jax.experimental.pallas import tpu as pltpu


# (fan_in, fan_out) of the five torch.nn.Linear layers.
LAYER_DIMS = [(5, 10), (10, 5), (5, 5), (5, 5), (5, 1)]


def _round_up(n, m):
    return ((n + m - 1) // m) * m


def _packed_layout():
    """Column layout of the single packed parameter buffer.

    Weights are stored torch-style (out, in) side by side along lanes,
    followed by the biases as (out, 1) columns.  Rows 0:out hold each param.
    """
    w_cols, col = [], 0
    for fan_in, _ in LAYER_DIMS:
        w_cols.append(col)
        col += fan_in
    b_cols = []
    for _ in LAYER_DIMS:
        b_cols.append(col)
        col += 1
    rows = max(fan_out for _, fan_out in LAYER_DIMS)   # 10
    return rows, col, tuple(w_cols), tuple(b_cols)


_P_ROWS, _P_COLS, _W_COLS, _B_COLS = _packed_layout()


def _pack_params(params):
    """params: list of (weight (out, in), bias (out,)) torch-style arrays."""
    P = jnp.zeros((_P_ROWS, _P_COLS), jnp.float32)
    for li, (w, b) in enumerate(params):
        w = jnp.asarray(w, jnp.float32)
        b = jnp.asarray(b, jnp.float32)
        fan_out, fan_in = w.shape
        P = P.at[0:fan_out, _W_COLS[li]:_W_COLS[li] + fan_in].set(w)
        P = P.at[0:fan_out, _B_COLS[li]:_B_COLS[li] + 1].set(b.reshape(fan_out, 1))
    return P


def _dense(h, w, b, *, relu):
    """out (fo, Bt) = W (fo, fi) @ h (fi, Bt) + b (fo, 1).

    fi, fo <= 10, so this is an unrolled chain of lane-dense VPU broadcast
    multiply/adds instead of a (heavily padded) MXU matmul.
    """
    fan_in = w.shape[1]
    acc = w[:, 0:1] * h[0:1, :] + b                       # (fo, Bt)
    for k in range(1, fan_in):
        acc = acc + w[:, k:k + 1] * h[k:k + 1, :]
    return jnp.maximum(acc, 0.0) if relu else acc


def _forward_logits(x, p_ref):
    """x: (5, Bt) activations (batch on lanes) -> (1, Bt) pre-softmax logits."""
    h = x
    n_layers = len(LAYER_DIMS)
    for li, (fan_in, fan_out) in enumerate(LAYER_DIMS):
        w = p_ref[0:fan_out, _W_COLS[li]:_W_COLS[li] + fan_in]   # (fo, fi)
        b = p_ref[0:fan_out, _B_COLS[li]:_B_COLS[li] + 1]        # (fo, 1)
        h = _dense(h, w, b, relu=(li < n_layers - 1))
    return h


def network_kernel(x_ref, p_ref, o_ref):
    logits = _forward_logits(x_ref[...], p_ref)            # (1, Bt)
    # torch.nn.Softmax(dim=1) over the size-1 output-feature axis is
    # identically exp(z - z) / 1 == 1.0, so emit the constant directly
    # (bit-exact vs PyTorch for finite logits).  The MLP above is kept for
    # clarity; the compiler is free to DCE it.
    o_ref[...] = jnp.ones_like(logits)


def logits_kernel(x_ref, p_ref, o_ref):
    # Test-only entry point exposing the pre-softmax logits so the dense
    # layers can actually be validated (the module's own output is constant).
    o_ref[...] = _forward_logits(x_ref[...], p_ref)


def _run(kernel, x, params, *, block_b=2048):
    B = x.shape[0]
    P = _pack_params(params)

    # Batch-on-lanes layout: (B, 5) -> (5, B), padded to a lane-aligned block.
    bt = min(block_b, _round_up(B, 128))
    Bp = _round_up(B, bt)
    xt = jnp.zeros((5, Bp), jnp.float32).at[:, :B].set(jnp.asarray(x, jnp.float32).T)

    out_t = pl.pallas_call(
        kernel,
        out_shape=jax.ShapeDtypeStruct((1, Bp), jnp.float32),
        grid=(Bp // bt,),
        in_specs=[
            pl.BlockSpec((5, bt), lambda i: (0, i)),              # stream x blocks
            pl.BlockSpec((_P_ROWS, _P_COLS), lambda i: (0, 0)),   # params resident
        ],
        out_specs=pl.BlockSpec((1, bt), lambda i: (0, i)),        # lane-dense store
        compiler_params=pltpu.CompilerParams(
            dimension_semantics=("parallel",)),                   # megacore on v7x
    )(xt, P)

    return out_t[:, :B].T                                         # back to (B, 1)


def network_forward(x, params, *, block_b=2048):
    """Eval-mode forward of `Network`: x (B, 5) -> softmax output (B, 1)."""
    return _run(network_kernel, x, params, block_b=block_b)


def network_logits(x, params, *, block_b=2048):
    """Pre-softmax logits (B, 1); used to validate the in-kernel MLP math."""
    return _run(logits_kernel, x, params, block_b=block_b)


def init_params(key):
    """torch.nn.Linear default init: U(-1/sqrt(fan_in), 1/sqrt(fan_in))."""
    params = []
    for fan_in, fan_out in LAYER_DIMS:
        key, kw, kb = jax.random.split(key, 3)
        bound = 1.0 / jnp.sqrt(jnp.float32(fan_in))
        w = jax.random.uniform(kw, (fan_out, fan_in), jnp.float32, -bound, bound)
        b = jax.random.uniform(kb, (fan_out,), jnp.float32, -bound, bound)
        params.append((w, b))
    return params


def reference_logits(x, params):
    h = jnp.asarray(x, jnp.float32)
    for i, (w, b) in enumerate(params):
        h = h @ jnp.asarray(w, jnp.float32).T + jnp.asarray(b, jnp.float32)
        if i < len(params) - 1:
            h = jnp.maximum(h, 0.0)
    return h


def reference_forward(x, params):
    return jax.nn.softmax(reference_logits(x, params), axis=1)


if __name__ == "__main__":
    key = jax.random.PRNGKey(0)
    key, kx = jax.random.split(key)
    B = 8
    x = jax.random.normal(kx, (B, 5), jnp.float32)
    params = init_params(key)

    out = jax.block_until_ready(network_forward(x, params))
    ref = reference_forward(x, params)
    assert out.shape == (B, 1)
    assert jnp.allclose(out, ref, atol=1e-6, rtol=1e-6)

    # The module's Softmax(dim=1) over a 1-wide head makes its output
    # identically 1.0, so additionally check the hidden-layer math through
    # the pre-softmax logits.
    logits = jax.block_until_ready(network_logits(x, params))
    logits_ref = reference_logits(x, params)
    assert logits.shape == (B, 1)
    assert jnp.allclose(logits, logits_ref, atol=1e-5, rtol=1e-5)

    print("KERNEL_OK")
</pallas_src>

<mosaic_0001>
module attributes {stable_mosaic.version = 11 : i64} {
  func.func @network_kernel(%arg0: i32, %arg1: memref<5x128xf32, #tpu.memory_space<vmem>>, %arg2: memref<10x35xf32, #tpu.memory_space<vmem>>, %arg3: memref<1x128xf32, #tpu.memory_space<vmem>>) attributes {dimension_semantics = [#tpu.dimension_semantics<parallel>], iteration_bounds = array<i64: 1>, scalar_prefetch = 0 : i64, scratch_operands = 0 : i64, tpu.core_type = #tpu.core_type<tc>, window_params = [{transform_indices = @transform_0, window_bounds = array<i64: 5, 128>}, {pipeline_mode = #tpu.pipeline_mode<synchronous>, transform_indices = @transform_1, window_bounds = array<i64: 10, 35>}, {transform_indices = @transform_2, window_bounds = array<i64: 1, 128>}]} {
    %cst = arith.constant 1.000000e+00 : f32
    %0 = vector.broadcast %cst : f32 to vector<1x128xf32>
    %c0 = arith.constant 0 : index
    %c0_0 = arith.constant 0 : index
    %1 = vector.load %arg3[%c0, %c0_0] : memref<1x128xf32, #tpu.memory_space<vmem>>, vector<1x128xf32>
    tpu.vector_store %arg3[%c0, %c0_0], %0 {strides = array<i32>} : memref<1x128xf32, #tpu.memory_space<vmem>>, vector<1x128xf32>,
    return
  }
  func.func @transform_0(%arg0: i32) -> (i32, i32) {
    %c0_i32 = arith.constant 0 : i32
    %c0_i32_0 = arith.constant 0 : i32
    return %c0_i32, %arg0 : i32, i32
  }
  func.func @transform_1(%arg0: i32) -> (i32, i32) {
    %c0_i32 = arith.constant 0 : i32
    %c0_i32_0 = arith.constant 0 : i32
    %c0_i32_1 = arith.constant 0 : i32
    return %c0_i32, %c0_i32_0 : i32, i32
  }
  func.func @transform_2(%arg0: i32) -> (i32, i32) {
    %c0_i32 = arith.constant 0 : i32
    %c0_i32_0 = arith.constant 0 : i32
    return %c0_i32, %arg0 : i32, i32
  }
}

</mosaic_0001>

<bundles_post_ra>
// kernel: tpu_custom_call.1
= control target key start
LH: loop header
LB: loop body
LE: loop exit
PB: predicated region body
PF: predicated region fallthrough
CT: control target
= control target key end

     0   :  { %7 = vsyncpa [#allocation3], 0  ;;  %s175_s0 = inlined_call_operand.hbm [shape: f32[5,128], index: 0, kind: input, shape index: {}]   ;;  %s176_s1 = inlined_call_operand.hbm [shape: f32[10,35], index: 1, kind: input, shape index: {}]   ;;  %s177_s2 = inlined_call_operand.hbm [shape: f32[1,128], index: 2, kind: output, shape index: {}]  }
   0x1   :  { %8 = vsyncpa [#allocation6], 0 }
   0x2   :  { %9 = vsyncpa [#allocation4], 0  ;;  %s15_s11 = sshll.u32 %s175_s0, 4  ;;  %s145_s12 = smov [#allocation2]   ;;  %s16_s11 = int_to_ptr.hbm [resolvable:$true] %s15_s11 }
   0x3   :  { %s17_s13 = sshll.u32 %s145_s12, 4  ;;  %s25_s16 = sshll.u32 %s176_s1, 4  ;;  %s18_s13 = int_to_ptr.vmem [resolvable:$true] %s17_s13  ;;  %s26_s16 = int_to_ptr.hbm [resolvable:$true] %s25_s16 }
   0x4   :  { %20 = dma.hbm_to_vmem [thread:$0]  %s16_s11, 128, %s18_s13, [#allocation3]  }
   0x5   :  { %s146_s17 = smov [#allocation5]   ;;  %s147_s19 = smov 128  }
   0x6   :  { %s27_s18 = sshll.u32 %s146_s17, 4  ;;  %s148_s20 = smov 8   ;;  %s28_s18 = int_to_ptr.vmem [resolvable:$true] %s27_s18 }
   0x7   :  { %33 = dma.hbm_to_vmem [thread:$0]  %s26_s16, 256, %s28_s18, [#allocation6], %s147_s19, %s147_s19, %s148_s20  }
   0x8   :  { %139 = dma.done.wait [#allocation3], 128  }
   0x9   :  { %140 = vsyncadd [#allocation3], 4294967168 }
   0xa   :  { %141 = dma.done.wait [#allocation6], 256  }
   0xb   :  { %142 = vsyncadd [#allocation6], 4294967040  ;;  %s50_s22 = sshll.u32 %s177_s2, 4  ;;  %v149_v0 = vmov 1.0   ;;  %s150_s23 = smov [#allocation7]   ;;  %s51_s22 = int_to_ptr.hbm [resolvable:$true] %s50_s22 }
   0xc   :  { %42 = vst [vmem:[#allocation7] sm:$0x1] %v149_v0  ;;  %s48_s1 = sshll.u32 %s150_s23, 4  ;;  %s49_s1 = int_to_ptr.vmem [resolvable:$true] %s48_s1 }
   0xd   :  { %53 = dma.vmem_to_hbm [thread:$0]  %s49_s1, 16, %s51_s22, [#allocation4]  }
   0xe   :  { %143 = dma.done.wait [#allocation4], 16  }
   0xf   :  { %144 = vsyncadd [#allocation4], 4294967280 }
  0x10   :  { %58 = vsyncpa [#allocation3], 1 }
  0x11   :  { %59 = vsyncpa [#allocation6], 1 }
  0x12   :  { %60 = vsyncpa [#allocation4], 1 }

</bundles_post_ra>
